<compile_context>
chip_gen: v7x
topology: tpu7x:2x2x1
jax: 0.10.0
libtpu: 0.0.40
codegen_flags: <defaults>
</compile_context>

<pallas_src>
import math
from functools import partial

import jax
import jax.numpy as jnp
from jax import lax
from jax.experimental import pallas as pl
from jax.experimental.pallas import tpu as pltpu

_LN_EPS = 1e-5
_INV_SQRT2 = 1.0 / math.sqrt(2.0)
_LANE = 128
_SUBLANE = 8


def _round_up(n, m):
    return ((n + m - 1) // m) * m


def _projection_kernel(x_ref, w1_ref, b1_ref, w2_ref, b2_ref, g_ref, beta_ref,
                       o_ref, *, p_actual):
    # Matmuls consume the stored dtype directly (bf16 -> bf16 MXU path);
    # accumulation and all elementwise math stay in f32.
    x = x_ref[...]

    # projected = x @ W1 + b1   (f32 accumulate)
    projected = jnp.dot(x, w1_ref[...], preferred_element_type=jnp.float32)
    projected = projected + b1_ref[...].astype(jnp.float32)

    # Exact erf GELU (matches nn.GELU() default).
    h = 0.5 * projected * (1.0 + lax.erf(projected * _INV_SQRT2))

    # y = h @ W2 + b2  (cast h to the weight dtype so bf16 weights keep the
    # fast MXU path; no-op for f32 weights).
    y = jnp.dot(h.astype(w2_ref.dtype), w2_ref[...],
                preferred_element_type=jnp.float32)
    y = y + b2_ref[...].astype(jnp.float32)

    # Dropout is identity at inference; residual add.
    y = y + projected

    # LayerNorm over the real P columns only (P may be lane-padded to 128k).
    p_padded = y.shape[-1]
    if p_actual == p_padded:
        mean = jnp.mean(y, axis=-1, keepdims=True)
        centered = y - mean
        var = jnp.mean(centered * centered, axis=-1, keepdims=True)
    else:
        lane = lax.broadcasted_iota(jnp.int32, y.shape, dimension=1)
        mask = (lane < p_actual).astype(jnp.float32)
        inv_p = 1.0 / float(p_actual)
        mean = jnp.sum(y * mask, axis=-1, keepdims=True) * inv_p
        centered = (y - mean) * mask
        var = jnp.sum(centered * centered, axis=-1, keepdims=True) * inv_p
    normed = centered * lax.rsqrt(var + _LN_EPS)
    out = normed * g_ref[...].astype(jnp.float32) + beta_ref[...].astype(jnp.float32)

    o_ref[...] = out.astype(o_ref.dtype)


def projection_forward(x, params, *, tm=256, compute_dtype=None):
    """x: (..., E).  Returns (..., P).

    compute_dtype: optional dtype (e.g. jnp.bfloat16) for x / W1 / W2 fed to
    the MXU; accumulation is always f32.
    """
    w1, b1, w2, b2, gamma, beta = (
        params["w1"], params["b1"], params["w2"], params["b2"],
        params["gamma"], params["beta"],
    )
    orig_shape = x.shape
    out_dtype = x.dtype
    E = orig_shape[-1]
    P = w1.shape[1]

    x2d = x.reshape(-1, E)
    M = x2d.shape[0]

    if compute_dtype is not None:
        x2d = x2d.astype(compute_dtype)
        w1 = w1.astype(compute_dtype)
        w2 = w2.astype(compute_dtype)

    # ---- lane-dense projection dim: pad P -> multiple of 128 ----------------
    Pp = _round_up(P, _LANE)
    if Pp != P:
        pad = Pp - P
        w1 = jnp.pad(w1, ((0, 0), (0, pad)))
        w2 = jnp.pad(w2, ((0, pad), (0, pad)))
        b1 = jnp.pad(b1, (0, pad))
        b2 = jnp.pad(b2, (0, pad))
        gamma = jnp.pad(gamma, (0, pad))
        beta = jnp.pad(beta, (0, pad))

    # ---- ragged / small M: 8-aligned tile, pad M to a multiple of it --------
    tm_eff = max(_SUBLANE, _round_up(min(tm, M), _SUBLANE))
    Mp = _round_up(M, tm_eff)
    if Mp != M:
        x2d = jnp.pad(x2d, ((0, Mp - M), (0, 0)))

    # biases / LN params as (1, Pp) f32 rows (broadcast over the row tile).
    b1r = b1.reshape(1, Pp).astype(jnp.float32)
    b2r = b2.reshape(1, Pp).astype(jnp.float32)
    gr = gamma.reshape(1, Pp).astype(jnp.float32)
    br = beta.reshape(1, Pp).astype(jnp.float32)

    grid = (Mp // tm_eff,)

    # Explicit VMEM budget: resident W1/W2 are still double-buffered by the
    # pipeline, plus double-buffered x/out tiles and f32 intermediates.
    # TODO(synk): for very large E/P (weights > ~half of v7x's 64 MiB VMEM),
    # stream K/N weight tiles over an "arbitrary" grid axis with a two-pass LN.
    x_isz = jnp.dtype(x2d.dtype).itemsize
    w_isz = jnp.dtype(w1.dtype).itemsize
    o_isz = jnp.dtype(out_dtype).itemsize
    est = (2 * (w1.size + w2.size) * w_isz
           + 2 * tm_eff * E * x_isz
           + 2 * tm_eff * Pp * o_isz
           + 8 * Pp * 4
           + 6 * tm_eff * Pp * 4)
    vmem_limit = int(max(16 << 20, min(100 << 20, 2 * est)))

    kernel = partial(_projection_kernel, p_actual=P)

    out = pl.pallas_call(
        kernel,
        out_shape=jax.ShapeDtypeStruct((Mp, Pp), out_dtype),
        grid_spec=pltpu.PrefetchScalarGridSpec(
            num_scalar_prefetch=0,
            grid=grid,
            in_specs=[
                pl.BlockSpec((tm_eff, E), lambda i: (i, 0)),   # x tile
                pl.BlockSpec((E, Pp), lambda i: (0, 0)),       # W1 (resident)
                pl.BlockSpec((1, Pp), lambda i: (0, 0)),       # b1
                pl.BlockSpec((Pp, Pp), lambda i: (0, 0)),      # W2 (resident)
                pl.BlockSpec((1, Pp), lambda i: (0, 0)),       # b2
                pl.BlockSpec((1, Pp), lambda i: (0, 0)),       # LN gamma
                pl.BlockSpec((1, Pp), lambda i: (0, 0)),       # LN beta
            ],
            out_specs=pl.BlockSpec((tm_eff, Pp), lambda i: (i, 0)),
        ),
        compiler_params=pltpu.CompilerParams(
            dimension_semantics=("parallel",),
            vmem_limit_bytes=vmem_limit,
        ),
    )(x2d, w1, b1r, w2, b2r, gr, br)

    out = out[:M, :P]
    return out.reshape(orig_shape[:-1] + (P,))


def init_params(key, embedding_dim, projection_dim, dtype=jnp.float32):
    k1, k2, k3, k4 = jax.random.split(key, 4)
    lim1 = 1.0 / math.sqrt(embedding_dim)
    lim2 = 1.0 / math.sqrt(projection_dim)
    return {
        "w1": jax.random.uniform(k1, (embedding_dim, projection_dim), dtype, -lim1, lim1),
        "b1": jax.random.uniform(k2, (projection_dim,), dtype, -lim1, lim1),
        "w2": jax.random.uniform(k3, (projection_dim, projection_dim), dtype, -lim2, lim2),
        "b2": jax.random.uniform(k4, (projection_dim,), dtype, -lim2, lim2),
        "gamma": jnp.ones((projection_dim,), dtype),
        "beta": jnp.zeros((projection_dim,), dtype),
    }


def _reference(x, p):
    projected = x @ p["w1"] + p["b1"]
    h = 0.5 * projected * (1.0 + lax.erf(projected * _INV_SQRT2))
    y = h @ p["w2"] + p["b2"]
    y = y + projected
    mean = jnp.mean(y, axis=-1, keepdims=True)
    var = jnp.mean((y - mean) ** 2, axis=-1, keepdims=True)
    return (y - mean) * lax.rsqrt(var + _LN_EPS) * p["gamma"] + p["beta"]


if __name__ == "__main__":
    B, S, E, P = 2, 8, 32, 64  # batch, seq, embedding_dim, projection_dim
    key = jax.random.PRNGKey(0)
    kx, kp = jax.random.split(key)
    x = jax.random.normal(kx, (B, S, E), jnp.float32)
    params = init_params(kp, E, P)

    ref = _reference(x, params)

    # f32 path (strict numerical check against the plain-JAX reference).
    out = projection_forward(x, params, tm=256)
    out = jax.block_until_ready(out)
    assert out.shape == (B, S, P)
    assert jnp.allclose(out, ref, atol=1e-4, rtol=1e-4)

    # bf16 MXU path (f32 accumulation) — loose tolerance sanity check.
    out_bf16 = projection_forward(x, params, tm=256, compute_dtype=jnp.bfloat16)
    out_bf16 = jax.block_until_ready(out_bf16)
    assert out_bf16.shape == (B, S, P)
    assert jnp.allclose(out_bf16, ref, atol=0.25, rtol=0.05)

    print("KERNEL_OK")
</pallas_src>

<mosaic_0001>
module attributes {stable_mosaic.version = 11 : i64} {
  func.func @_projection_kernel(%arg0: i32, %arg1: memref<16x32xf32, #tpu.memory_space<vmem>>, %arg2: memref<32x128xf32, #tpu.memory_space<vmem>>, %arg3: memref<1x128xf32, #tpu.memory_space<vmem>>, %arg4: memref<128x128xf32, #tpu.memory_space<vmem>>, %arg5: memref<1x128xf32, #tpu.memory_space<vmem>>, %arg6: memref<1x128xf32, #tpu.memory_space<vmem>>, %arg7: memref<1x128xf32, #tpu.memory_space<vmem>>, %arg8: memref<16x128xf32, #tpu.memory_space<vmem>>) attributes {dimension_semantics = [#tpu.dimension_semantics<parallel>], iteration_bounds = array<i64: 1>, scalar_prefetch = 0 : i64, scratch_operands = 0 : i64, tpu.core_type = #tpu.core_type<tc>, window_params = [{transform_indices = @transform_0, window_bounds = array<i64: 16, 32>}, {pipeline_mode = #tpu.pipeline_mode<synchronous>, transform_indices = @transform_1, window_bounds = array<i64: 32, 128>}, {pipeline_mode = #tpu.pipeline_mode<synchronous>, transform_indices = @transform_2, window_bounds = array<i64: 1, 128>}, {pipeline_mode = #tpu.pipeline_mode<synchronous>, transform_indices = @transform_3, window_bounds = array<i64: 128, 128>}, {pipeline_mode = #tpu.pipeline_mode<synchronous>, transform_indices = @transform_4, window_bounds = array<i64: 1, 128>}, {pipeline_mode = #tpu.pipeline_mode<synchronous>, transform_indices = @transform_5, window_bounds = array<i64: 1, 128>}, {pipeline_mode = #tpu.pipeline_mode<synchronous>, transform_indices = @transform_6, window_bounds = array<i64: 1, 128>}, {transform_indices = @transform_7, window_bounds = array<i64: 16, 128>}]} {
    %c0 = arith.constant 0 : index
    %c0_0 = arith.constant 0 : index
    %0 = vector.load %arg1[%c0, %c0_0] : memref<16x32xf32, #tpu.memory_space<vmem>>, vector<16x32xf32>
    %c0_1 = arith.constant 0 : index
    %c0_2 = arith.constant 0 : index
    %1 = vector.load %arg2[%c0_1, %c0_2] : memref<32x128xf32, #tpu.memory_space<vmem>>, vector<32x128xf32>
    %cst = arith.constant dense<0.000000e+00> : vector<16x128xf32>
    %2 = tpu.matmul %0, %1, %cst {dimension_numbers = #tpu.dot_dimension_numbers<[1], [0], [0], [1], [0, 0, 1, 1], [], []>} : vector<16x32xf32>, vector<32x128xf32>, vector<16x128xf32> -> vector<16x128xf32>
    %c0_3 = arith.constant 0 : index
    %c0_4 = arith.constant 0 : index
    %3 = vector.load %arg3[%c0_3, %c0_4] : memref<1x128xf32, #tpu.memory_space<vmem>>, vector<1x128xf32>
    %4 = vector.broadcast %3 : vector<1x128xf32> to vector<16x128xf32>
    %5 = arith.addf %2, %4 : vector<16x128xf32>
    %cst_5 = arith.constant 5.000000e-01 : f32
    %6 = vector.broadcast %cst_5 : f32 to vector<16x128xf32>
    %7 = arith.mulf %6, %5 : vector<16x128xf32>
    %cst_6 = arith.constant 0.707106769 : f32
    %8 = vector.broadcast %cst_6 : f32 to vector<16x128xf32>
    %9 = arith.mulf %5, %8 : vector<16x128xf32>
    %10 = math.erf %9 : vector<16x128xf32>
    %cst_7 = arith.constant 1.000000e+00 : f32
    %11 = vector.broadcast %cst_7 : f32 to vector<16x128xf32>
    %12 = arith.addf %11, %10 : vector<16x128xf32>
    %13 = arith.mulf %7, %12 : vector<16x128xf32>
    %c0_8 = arith.constant 0 : index
    %c0_9 = arith.constant 0 : index
    %14 = vector.load %arg4[%c0_8, %c0_9] : memref<128x128xf32, #tpu.memory_space<vmem>>, vector<128x128xf32>
    %cst_10 = arith.constant dense<0.000000e+00> : vector<16x128xf32>
    %15 = tpu.matmul %13, %14, %cst_10 {dimension_numbers = #tpu.dot_dimension_numbers<[1], [0], [0], [1], [0, 0, 1, 1], [], []>} : vector<16x128xf32>, vector<128x128xf32>, vector<16x128xf32> -> vector<16x128xf32>
    %c0_11 = arith.constant 0 : index
    %c0_12 = arith.constant 0 : index
    %16 = vector.load %arg5[%c0_11, %c0_12] : memref<1x128xf32, #tpu.memory_space<vmem>>, vector<1x128xf32>
    %17 = vector.broadcast %16 : vector<1x128xf32> to vector<16x128xf32>
    %18 = arith.addf %15, %17 : vector<16x128xf32>
    %19 = arith.addf %18, %5 : vector<16x128xf32>
    %20 = tpu.iota {dimensions = array<i32: 1>} : vector<16x128xi32>
    %c64_i32 = arith.constant 64 : i32
    %21 = vector.broadcast %c64_i32 : i32 to vector<16x128xi32>
    %22 = arith.cmpi slt, %20, %21 : vector<16x128xi32>
    %23 = arith.extui %22 : vector<16x128xi1> to vector<16x128xi32>
    %24 = arith.sitofp %23 : vector<16x128xi32> to vector<16x128xf32>
    %25 = arith.mulf %19, %24 : vector<16x128xf32>
    %cst_13 = arith.constant dense<0.000000e+00> : vector<16xf32>
    %26 = vector.multi_reduction <add>, %25, %cst_13 [1] : vector<16x128xf32> to vector<16xf32>
    %27 = vector.shape_cast %26 : vector<16xf32> to vector<16x1xf32>
    %cst_14 = arith.constant 1.562500e-02 : f32
    %28 = vector.broadcast %cst_14 : f32 to vector<16x1xf32>
    %29 = arith.mulf %27, %28 : vector<16x1xf32>
    %30 = vector.broadcast %29 : vector<16x1xf32> to vector<16x128xf32>
    %31 = arith.subf %19, %30 : vector<16x128xf32>
    %32 = arith.mulf %31, %24 : vector<16x128xf32>
    %33 = arith.mulf %32, %32 : vector<16x128xf32>
    %cst_15 = arith.constant dense<0.000000e+00> : vector<16xf32>
    %34 = vector.multi_reduction <add>, %33, %cst_15 [1] : vector<16x128xf32> to vector<16xf32>
    %35 = vector.shape_cast %34 : vector<16xf32> to vector<16x1xf32>
    %cst_16 = arith.constant 1.562500e-02 : f32
    %36 = vector.broadcast %cst_16 : f32 to vector<16x1xf32>
    %37 = arith.mulf %35, %36 : vector<16x1xf32>
    %cst_17 = arith.constant 9.99999974E-6 : f32
    %38 = vector.broadcast %cst_17 : f32 to vector<16x1xf32>
    %39 = arith.addf %37, %38 : vector<16x1xf32>
    %40 = math.rsqrt %39 : vector<16x1xf32>
    %41 = vector.broadcast %40 : vector<16x1xf32> to vector<16x128xf32>
    %42 = arith.mulf %32, %41 : vector<16x128xf32>
    %c0_18 = arith.constant 0 : index
    %c0_19 = arith.constant 0 : index
    %43 = vector.load %arg6[%c0_18, %c0_19] : memref<1x128xf32, #tpu.memory_space<vmem>>, vector<1x128xf32>
    %44 = vector.broadcast %43 : vector<1x128xf32> to vector<16x128xf32>
    %45 = arith.mulf %42, %44 : vector<16x128xf32>
    %c0_20 = arith.constant 0 : index
    %c0_21 = arith.constant 0 : index
    %46 = vector.load %arg7[%c0_20, %c0_21] : memref<1x128xf32, #tpu.memory_space<vmem>>, vector<1x128xf32>
    %47 = vector.broadcast %46 : vector<1x128xf32> to vector<16x128xf32>
    %48 = arith.addf %45, %47 : vector<16x128xf32>
    %c0_22 = arith.constant 0 : index
    %c0_23 = arith.constant 0 : index
    %49 = vector.load %arg8[%c0_22, %c0_23] : memref<16x128xf32, #tpu.memory_space<vmem>>, vector<16x128xf32>
    tpu.vector_store %arg8[%c0_22, %c0_23], %48 {strides = array<i32>} : memref<16x128xf32, #tpu.memory_space<vmem>>, vector<16x128xf32>,
    return
  }
  func.func @transform_0(%arg0: i32) -> (i32, i32) {
    %c0_i32 = arith.constant 0 : i32
    %c0_i32_0 = arith.constant 0 : i32
    return %arg0, %c0_i32 : i32, i32
  }
  func.func @transform_1(%arg0: i32) -> (i32, i32) {
    %c0_i32 = arith.constant 0 : i32
    %c0_i32_0 = arith.constant 0 : i32
    %c0_i32_1 = arith.constant 0 : i32
    return %c0_i32, %c0_i32_0 : i32, i32
  }
  func.func @transform_2(%arg0: i32) -> (i32, i32) {
    %c0_i32 = arith.constant 0 : i32
    %c0_i32_0 = arith.constant 0 : i32
    %c0_i32_1 = arith.constant 0 : i32
    return %c0_i32, %c0_i32_0 : i32, i32
  }
  func.func @transform_3(%arg0: i32) -> (i32, i32) {
    %c0_i32 = arith.constant 0 : i32
    %c0_i32_0 = arith.constant 0 : i32
    %c0_i32_1 = arith.constant 0 : i32
    return %c0_i32, %c0_i32_0 : i32, i32
  }
  func.func @transform_4(%arg0: i32) -> (i32, i32) {
    %c0_i32 = arith.constant 0 : i32
    %c0_i32_0 = arith.constant 0 : i32
    %c0_i32_1 = arith.constant 0 : i32
    return %c0_i32, %c0_i32_0 : i32, i32
  }
  func.func @transform_5(%arg0: i32) -> (i32, i32) {
    %c0_i32 = arith.constant 0 : i32
    %c0_i32_0 = arith.constant 0 : i32
    %c0_i32_1 = arith.constant 0 : i32
    return %c0_i32, %c0_i32_0 : i32, i32
  }
  func.func @transform_6(%arg0: i32) -> (i32, i32) {
    %c0_i32 = arith.constant 0 : i32
    %c0_i32_0 = arith.constant 0 : i32
    %c0_i32_1 = arith.constant 0 : i32
    return %c0_i32, %c0_i32_0 : i32, i32
  }
  func.func @transform_7(%arg0: i32) -> (i32, i32) {
    %c0_i32 = arith.constant 0 : i32
    %c0_i32_0 = arith.constant 0 : i32
    return %arg0, %c0_i32 : i32, i32
  }
}

</mosaic_0001>

<bundles_post_ra>
// kernel: tpu_custom_call.1
= control target key start
LH: loop header
LB: loop body
LE: loop exit
PB: predicated region body
PF: predicated region fallthrough
CT: control target
= control target key end

     0   :  { %12 = vsyncpa [#allocation3], 0  ;;  %s696_s0 = inlined_call_operand.hbm [shape: f32[16,32], index: 0, kind: input, shape index: {}]   ;;  %s697_s1 = inlined_call_operand.hbm [shape: f32[32,128], index: 1, kind: input, shape index: {}]   ;;  %s698_s2 = inlined_call_operand.vmem [shape: f32[1,128], index: 2, kind: input, shape index: {}]   ;;  %s699_s3 = inlined_call_operand.hbm [shape: f32[128,128], index: 3, kind: input, shape index: {}]   ;;  %s700_s4 = inlined_call_operand.vmem [shape: f32[1,128], index: 4, kind: input, shape index: {}]   ;;  %s701_s5 = inlined_call_operand.vmem [shape: f32[1,128], index: 5, kind: input, shape index: {}]   ;;  %s702_s6 = inlined_call_operand.vmem [shape: f32[1,128], index: 6, kind: input, shape index: {}]   ;;  %s703_s7 = inlined_call_operand.hbm [shape: f32[16,128], index: 7, kind: output, shape index: {}]  }
   0x1   :  { %13 = vsyncpa [#allocation6], 0 }
   0x2   :  { %14 = vsyncpa [#allocation4], 0  ;;  %s568_s24 = smov [#allocation5]   ;;  %s569_s26 = smov [#allocation2]  }
   0x3   :  { %s32_s25 = sshll.u32 %s568_s24, 4  ;;  %s20_s27 = sshll.u32 %s569_s26, 4  ;;  %s33_s25 = int_to_ptr.vmem [resolvable:$true] %s32_s25  ;;  %s615_s27 = int_to_ptr.vmem [resolvable:$true] %s20_s27 }
   0x4   :  { %s474_s30 = scalar_lea.hbm %s697_s1, 512 }
   0x5   :  { %p475_p0 = scmp.ne.s32.totalorder %s697_s1, %s474_s30  ;;  %p478_p1 = scmp.lt.u32.totalorder %s474_s30, %s697_s1 }
   0x7   :  { %p480_p2 = pnand %p478_p1, %p475_p0 }
   0x9   :  { %483 = shalt.err (!%p480_p2)
}
   0xa   :  { %s484_s12 = scalar_lea.vmem %s33_s25, 512  ;;  %p489_p4 = scmp.lt.s32.totalorder %s33_s25, %s33_s25 }
   0xb   :  { %p485_p3 = scmp.ne.s32.totalorder %s33_s25, %s484_s12  ;;  %p490_p5 = scmp.lt.s32.totalorder %s484_s12, %s484_s12 }
   0xd   :  { %p491_p6 = por %p490_p5, %p489_p4 }
   0xf   :  { %p492_p7 = pnand %p491_p6, %p485_p3 }
  0x11   :  { %495 = shalt.err (!%p492_p7)
}
  0x12   :  { %s570_s13 = smov 128   ;;  %s571_s14 = smov 8  }
  0x13   :  { %38 = dma.hbm_to_vmem [thread:$0]  %s697_s1, 512, %s33_s25, [#allocation6], %s570_s13, %s570_s13, %s571_s14  }
  0x14   :  { %s496_s19 = scalar_lea.hbm %s696_s0, 256 }
  0x15   :  { %p497_p8 = scmp.ne.s32.totalorder %s696_s0, %s496_s19  ;;  %p500_p9 = scmp.lt.u32.totalorder %s496_s19, %s696_s0 }
  0x17   :  { %p502_p10 = pnand %p500_p9, %p497_p8 }
  0x19   :  { %505 = shalt.err (!%p502_p10)
}
  0x1a   :  { %s506_s24 = scalar_lea.vmem %s615_s27, 256  ;;  %p511_p12 = scmp.lt.s32.totalorder %s615_s27, %s615_s27 }
  0x1b   :  { %p507_p11 = scmp.ne.s32.totalorder %s615_s27, %s506_s24  ;;  %p512_p13 = scmp.lt.s32.totalorder %s506_s24, %s506_s24 }
  0x1d   :  { %p513_p0 = por %p512_p13, %p511_p12 }
  0x1f   :  { %p514_p1 = pnand %p513_p0, %p507_p11 }
  0x21   :  { %517 = shalt.err (!%p514_p1)
}
  0x22   :  { %26 = dma.hbm_to_vmem [thread:$0]  %s696_s0, 256, %s615_s27, [#allocation3], %s570_s13, %s570_s13, %s571_s14  }
  0x23   :  { %s572_s26 = smov [#allocation7]   ;;  %s518_s8 = scalar_lea.hbm %s699_s3, 2048 }
  0x24   :  { %s46_s28 = sshll.u32 %s572_s26, 4  ;;  %p519_p2 = scmp.ne.s32.totalorder %s699_s3, %s518_s8  ;;  %s47_s28 = int_to_ptr.vmem [resolvable:$true] %s46_s28 }
  0x25   :  { %p522_p3 = scmp.lt.u32.totalorder %s518_s8, %s699_s3 }
  0x27   :  { %p524_p4 = pnand %p522_p3, %p519_p2 }
  0x29   :  { %527 = shalt.err (!%p524_p4)
}
  0x2a   :  { %s528_s15 = scalar_lea.vmem %s47_s28, 2048  ;;  %p533_p6 = scmp.lt.s32.totalorder %s47_s28, %s47_s28 }
  0x2b   :  { %p529_p5 = scmp.ne.s32.totalorder %s47_s28, %s528_s15  ;;  %p534_p7 = scmp.lt.s32.totalorder %s528_s15, %s528_s15 }
  0x2d   :  { %p535_p8 = por %p534_p7, %p533_p6 }
  0x2f   :  { %p536_p9 = pnand %p535_p8, %p529_p5 }
  0x31   :  { %539 = shalt.err (!%p536_p9)
}
  0x32   :  { %52 = dma.hbm_to_vmem [thread:$0]  %s699_s3, 2048, %s47_s28, [#allocation6], %s570_s13, %s570_s13, %s571_s14  }
  0x33   :  { %562 = dma.done.wait [#allocation3], 256  }
  0x34   :  { %563 = vsyncadd [#allocation3], 4294967040 }
  0x35   :  { %564 = dma.done.wait [#allocation6], 2560  }
  0x36   :  { %565 = vsyncadd [#allocation6], 4294964736  ;;  %vm81_vm0 = vcmask 261120   ;;  %v70_v0 = vld [vmem:[#allocation5] sm:$0xff]  ;;  %v71_v1 = vld [vmem:[#allocation5 + $0x8] sm:$0xff]  ;;  %v273_v47 = vlaneseq  ;;  %v573_v54 = vmov 0.0  }
  0x37   :  { %v72_v2 = vld [vmem:[#allocation5 + $0x10] sm:$0xff]  ;;  %v419_v3 = vpack.c.bf16 %v71_v1, %v70_v0  ;;  %v73_v4 = vld [vmem:[#allocation5 + $0x18] sm:$0xff]  ;;  %v173_v7 = vld [vmem:[#allocation7] sm:$0xff]  ;;  %s574_s21 = smov [#allocation8]  }
  0x38   :  { %v68_v5 = vld [vmem:[#allocation2] sm:$0xff]  ;;  %v423_v6 = vpack.c.bf16 %v73_v4, %v72_v2  ;;  %v174_v8 = vld [vmem:[#allocation7 + $0x8] sm:$0xff]  ;;  %v176_v11 = vld [vmem:[#allocation7 + $0x18] sm:$0xff]  ;;  %v274_v48 = vand.u32 127, %v273_v47  ;;  %s329_s22 = sshll.u32 %s574_s21, 4  ;;  %s330_s22 = int_to_ptr.vmem [resolvable:$true] %s329_s22 }
  0x39   :  { %381 = vmatprep.mubr.msk.f32.mxu0 %vm81_vm0, %v68_v5  ;;  %v175_v9 = vld [vmem:[#allocation7 + $0x10] sm:$0xff]  ;;  %420 = vmatprep.subr.bf16.mxu0 %v419_v3  ;;  %v427_v10 = vpack.c.bf16 %v174_v8, %v173_v7  ;;  %v177_v13 = vld [vmem:[#allocation7 + $0x20] sm:$0xff]  ;;  %v178_v14 = vld [vmem:[#allocation7 + $0x28] sm:$0xff]  ;;  %s540_s23 = scalar_lea.vmem %s330_s22, 256  ;;  %p545_p11 = scmp.lt.s32.totalorder %s330_s22, %s330_s22 }
  0x3a   :  { %422 = vmatpush3.bf16.msra.mxu0 %v419_v3  ;;  %v431_v12 = vpack.c.bf16 %v176_v11, %v175_v9  ;;  %v435_v15 = vpack.c.bf16 %v178_v14, %v177_v13  ;;  %v69_v16 = vld [vmem:[#allocation2 + $0x8] sm:$0xff]  ;;  %v179_v17 = vld [vmem:[#allocation7 + $0x30] sm:$0xff]  ;;  %v181_v20 = vld [vmem:[#allocation7 + $0x40] sm:$0xff]  ;;  %vm275_vm1 = vcmp.lt.s32.totalorder %v274_v48, 64  ;;  %p541_p10 = scmp.ne.s32.totalorder %s330_s22, %s540_s23  ;;  %p546_p12 = scmp.lt.s32.totalorder %s540_s23, %s540_s23 }
  0x3b   :  { %424 = vmatprep.subr.bf16.mxu0 %v423_v6  ;;  %428 = vmatprep.subr.bf16.mxu1 %v427_v10  ;;  %v180_v18 = vld [vmem:[#allocation7 + $0x38] sm:$0xff]  ;;  %v182_v21 = vld [vmem:[#allocation7 + $0x48] sm:$0xff]  ;;  %v183_v23 = vld [vmem:[#allocation7 + $0x50] sm:$0xff]  ;;  %v346_v55 = vsel %vm275_vm1, 1.0, %v573_v54 }
  0x3c   :  { %430 = vmatpush3.bf16.msra.mxu1 %v427_v10  ;;  %v439_v19 = vpack.c.bf16 %v180_v18, %v179_v17  ;;  %v443_v22 = vpack.c.bf16 %v182_v21, %v181_v20  ;;  %v184_v24 = vld [vmem:[#allocation7 + $0x58] sm:$0xff]  ;;  %v185_v25 = vld [vmem:[#allocation7 + $0x60] sm:$0xff]  ;;  %v186_v27 = vld [vmem:[#allocation7 + $0x68] sm:$0xff]  ;;  %p547_p13 = por %p546_p12, %p545_p11 }
  0x3d   :  { %432 = vmatprep.subr.bf16.mxu1 %v431_v12  ;;  %v447_v26 = vpack.c.bf16 %v184_v24, %v183_v23  ;;  %v451_v28 = vpack.c.bf16 %v186_v27, %v185_v25  ;;  %v187_v29 = vld [vmem:[#allocation7 + $0x70] sm:$0xff]  ;;  %v188_v30 = vld [vmem:[#allocation7 + $0x78] sm:$0xff] }
  0x3e   :  { %426 = vmatpush3.bf16.msra.mxu0 %v423_v6  ;;  %v455_v31 = vpack.c.bf16 %v188_v30, %v187_v29  ;;  %v342_v32 = vld [vmem:[%s698_s2] ss:$0 sm:$0xff]  ;;  %p548_p0 = pnand %p547_p13, %p541_p10 }
  0x3f   :  { %v345_v49 = vld [vmem:[%s700_s4] ss:$0 sm:$0xff] }
  0x40   :  { %434 = vmatpush3.bf16.msra.mxu1 %v431_v12  ;;  %v347_v13 = vld [vmem:[%s701_s5] ss:$0 sm:$0xff] }
  0x41   :  { %382 = vmatmul.mubr.msk.f32.vlgmr.msra.gmra.mrb[0].mxu0 %vm81_vm0, %v69_v16  ;;  %436 = vmatprep.subr.bf16.mxu1 %v435_v15 }
  0x44   :  { %438 = vmatpush3.bf16.msra.mxu1 %v435_v15  ;;  %v348_v15 = vld [vmem:[%s702_s6] ss:$0 sm:$0xff] }
  0x45   :  { %440 = vmatprep.subr.bf16.mxu1 %v439_v19 }
  0x48   :  { %442 = vmatpush3.bf16.msra.mxu1 %v439_v19 }
  0x49   :  { %444 = vmatprep.subr.bf16.mxu1 %v443_v22 }
  0x4c   :  { %446 = vmatpush3.bf16.msra.mxu1 %v443_v22 }
  0x4d   :  { %448 = vmatprep.subr.bf16.mxu1 %v447_v26 }
  0x50   :  { %450 = vmatpush3.bf16.msra.mxu1 %v447_v26 }
  0x51   :  { %452 = vmatprep.subr.bf16.mxu1 %v451_v28 }
  0x54   :  { %454 = vmatpush3.bf16.msra.mxu1 %v451_v28 }
  0x55   :  { %456 = vmatprep.subr.bf16.mxu1 %v455_v31 }
  0x58   :  { %458 = vmatpush3.bf16.msra.mxu1 %v455_v31 }
 0x114   :  { %v383_v33 = vpop.f32.mrb[0].mxu0 }
 0x115   :  { %v160_v34 = vadd.f32 %v383_v33, %v342_v32  ;;  %v154_v35 = vpop.f32.mrb[1].mxu0 }
 0x116   :  { %v155_v36 = vadd.f32 %v342_v32, %v154_v35 }
 0x117   :  { %v166_v37 = vmul.f32 0.70710677, %v160_v34  ;;  %v164_v44 = vmul.f32 0.5, %v160_v34 }
 0x118   :  { %v165_v38 = vmul.f32 0.70710677, %v155_v36  ;;  %v163_v42 = vmul.f32 0.5, %v155_v36 }
 0x119   :  { %466 = verf.f32 %v166_v37 }
 0x11a   :  { %468 = verf.f32 %v165_v38 }
 0x123   :  { %v467_v39 = vpop.eup %466 }
 0x124   :  { %v469_v40 = vpop.eup %468  ;;  %v170_v41 = vadd.f32 1.0, %v467_v39 }
 0x125   :  { %v169_v43 = vadd.f32 1.0, %v469_v40 }
 0x126   :  { %v172_v46 = vmul.f32 %v170_v41, %v164_v44 }
 0x127   :  { %v171_v45 = vmul.f32 %v169_v43, %v163_v42 }
 0x129   :  { %416 = vmatprep.mubr.f32.mxu1 %v171_v45 }
 0x12a   :  { %417 = vmatmul.mubr.f32.vlgmr.msra.gmra.mrb[0].mxu1 %v172_v46 }
 0x1fd   :  { %v418_v50 = vpop.f32.mrb[0].mxu1 }
 0x1fe   :  { %v262_v51 = vpop.f32.mrb[1].mxu1  ;;  %v268_v52 = vadd.f32 %v418_v50, %v345_v49 }
 0x1ff   :  { %v263_v53 = vadd.f32 %v345_v49, %v262_v51 }
 0x200   :  { %v272_v57 = vadd.f32 %v268_v52, %v160_v34 }
 0x201   :  { %v271_v56 = vadd.f32 %v263_v53, %v155_v36 }
 0x202   :  { %v279_v59 = vmul.f32 %v346_v55, %v272_v57 }
 0x203   :  { %v278_v58 = vmul.f32 %v346_v55, %v271_v56 }
 0x205   :  { %280 = vadd.xlane.f32.xlu0 %v278_v58 }
 0x209   :  { %282 = vadd.xlane.f32.xlu0 %v279_v59 }
 0x292   :  { %v281_v60 = vpop.xlane.xlu0 %280 }
 0x293   :  { %v284_v61 = vmul.f32 0.015625, %v281_v60 }
 0x295   :  { %v286_v62 = vsub.f32 %v271_v56, %v284_v61 }
 0x296   :  { %v283_v63 = vpop.xlane.xlu0 %282 }
 0x297   :  { %v285_v0 = vmul.f32 0.015625, %v283_v63  ;;  %v288_v1 = vmul.f32 %v346_v55, %v286_v62 }
 0x299   :  { %v287_v2 = vsub.f32 %v272_v57, %v285_v0  ;;  %v290_v3 = vmul.f32 %v288_v1, %v288_v1 }
 0x29b   :  { %292 = vadd.xlane.f32.xlu1 %v290_v3  ;;  %v289_v4 = vmul.f32 %v346_v55, %v287_v2 }
 0x29d   :  { %v291_v5 = vmul.f32 %v289_v4, %v289_v4 }
 0x29f   :  { %294 = vadd.xlane.f32.xlu1 %v291_v5 }
 0x328   :  { %v293_v6 = vpop.xlane.xlu1 %292 }
 0x329   :  { %v296_v7 = vmul.f32 0.015625, %v293_v6 }
 0x32b   :  { %v298_v8 = vadd.f32 1e-05, %v296_v7 }
 0x32c   :  { %v295_v9 = vpop.xlane.xlu1 %294 }
 0x32d   :  { %470 = vrsqrt.f32 %v298_v8  ;;  %v297_v10 = vmul.f32 0.015625, %v295_v9 }
 0x32f   :  { %v299_v11 = vadd.f32 1e-05, %v297_v10 }
 0x331   :  { %472 = vrsqrt.f32 %v299_v11 }
 0x337   :  { %v471_v12 = vpop.eup %470 }
 0x338   :  { %v302_v14 = vmul.f32 %v471_v12, %v288_v1 }
 0x33a   :  { %v311_v16 = vmul.f32 %v347_v13, %v302_v14 }
 0x33b   :  { %v473_v17 = vpop.eup %472 }
 0x33c   :  { %v303_v18 = vmul.f32 %v473_v17, %v289_v4  ;;  %v320_v19 = vadd.f32 %v348_v15, %v311_v16 }
 0x33e   :  { %v312_v20 = vmul.f32 %v347_v13, %v303_v18  ;;  %322 = vst [vmem:[#allocation8] sm:$0xff] %v320_v19 }
 0x340   :  { %v321_v21 = vadd.f32 %v348_v15, %v312_v20 }
 0x342   :  { %323 = vst [vmem:[#allocation8 + $0x8] sm:$0xff] %v321_v21 }
 0x343   :  { %551 = shalt.err (!%p548_p0)
}
 0x344   :  { %s552_s24 = scalar_lea.hbm %s703_s7, 256 }
 0x345   :  { %p553_p1 = scmp.ne.s32.totalorder %s703_s7, %s552_s24  ;;  %p556_p2 = scmp.lt.u32.totalorder %s552_s24, %s703_s7 }
 0x347   :  { %p558_p3 = pnand %p556_p2, %p553_p1 }
 0x349   :  { %561 = shalt.err (!%p558_p3)
}
 0x34a   :  { %335 = dma.vmem_to_hbm [thread:$0]  %s330_s22, 256, %s703_s7, [#allocation4], %s570_s13, %s570_s13, %s571_s14  }
 0x34b   :  { %566 = dma.done.wait [#allocation4], 256  }
 0x34c   :  { %567 = vsyncadd [#allocation4], 4294967040 }
 0x34d   :  { %339 = vsyncpa [#allocation3], 1 }
 0x34e   :  { %340 = vsyncpa [#allocation6], 1 }
 0x34f   :  { %341 = vsyncpa [#allocation4], 1 }

</bundles_post_ra>
